<compile_context>
chip_gen: v6e
topology: v6e:2x2x1
jax: 0.10.0
libtpu: 0.0.40
codegen_flags: <defaults>
</compile_context>

<pallas_src>
import functools

import jax
import jax.numpy as jnp
from jax.experimental import pallas as pl
from jax.experimental.pallas import tpu as pltpu

HID1 = 128
HID2 = 64
LANE = 128
SUBLANE = 16  # sublane multiple safe for both f32 (8) and bf16 (16) tiles


def _round_up(x, m):
    return (x + m - 1) // m * m


def _cdiv(a, b):
    return (a + b - 1) // b


def dqn_kernel(x_ref, w1_ref, b1_ref, w2_ref, b2_ref, w3_ref, b3_ref, o_ref):
    # Layer 1: in-kernel f32->bf16 cast of the x tile, MXU matmul, f32 accum.
    # TODO(synk): input_dim=16 underfills the MXU K dim; padding K to 128 would
    # 8x the x DMA bytes on an HBM-bound kernel, so intentionally not done.
    x = x_ref[...].astype(w1_ref.dtype)
    h1 = jnp.dot(x, w1_ref[...], preferred_element_type=jnp.float32)
    h1 = jnp.maximum(h1 + b1_ref[...], 0.0)
    # Layer 2: (TB, 128) @ (128, 128 padded) -> f32 accumulate, bias + ReLU.
    h2 = jnp.dot(h1.astype(w2_ref.dtype), w2_ref[...],
                 preferred_element_type=jnp.float32)
    h2 = jnp.maximum(h2 + b2_ref[...], 0.0)
    # Layer 3: lane-dense (TB, 128) store in the narrow output dtype (bf16).
    # TODO(synk): if the consumer only needs argmax(Q) (action selection), an
    # in-kernel argmax over the real lanes would cut output HBM traffic ~30x.
    out = jnp.dot(h2.astype(w3_ref.dtype), w3_ref[...],
                  preferred_element_type=jnp.float32)
    o_ref[...] = (out + b3_ref[...]).astype(o_ref.dtype)


def prepare_params(params, compute_dtype=jnp.bfloat16):
    """Pad + cast weights once (hoisted out of the per-call forward path).

    Zero-padded hidden-2 columns flow through bias(0)+ReLU as zeros and hit
    the matching zero rows of w3, so results are unchanged.
    """
    w1, b1, w2, b2, w3, b3 = params
    out_dim = w3.shape[1]
    h2_p = _round_up(HID2, LANE)      # 64  -> 128
    out_p = _round_up(out_dim, LANE)  # e.g. 4 -> 128
    w2_p = jnp.zeros((HID1, h2_p), w2.dtype).at[:, :HID2].set(w2)
    b2_p = jnp.zeros((1, h2_p), b2.dtype).at[:, :HID2].set(b2)
    w3_p = jnp.zeros((h2_p, out_p), w3.dtype).at[:HID2, :out_dim].set(w3)
    b3_p = jnp.zeros((1, out_p), b3.dtype).at[:, :out_dim].set(b3)
    prepared = (
        w1.astype(compute_dtype),
        b1.astype(jnp.float32),
        w2_p.astype(compute_dtype),
        b2_p.astype(jnp.float32),
        w3_p.astype(compute_dtype),
        b3_p.astype(jnp.float32),
    )
    return prepared, out_dim


@functools.partial(jax.jit, static_argnames=("out_dim", "tile_b"))
def dqn_forward_prepared(x, prepared, *, out_dim, tile_b=4096):
    w1c, b1f, w2c, b2f, w3c, b3f = prepared
    B, in_dim = x.shape
    h2_p = w2c.shape[1]
    out_p = w3c.shape[1]
    out_dtype = w1c.dtype  # narrow (bf16) output store halves HBM writeback

    # Balanced batch tiling: caps padding waste at one sublane group and,
    # when the batch is large enough, guarantees >= 2 grid steps so v7x's
    # second TensorCore is used via the "parallel" batch axis.
    ntiles = _cdiv(B, tile_b)
    if ntiles == 1 and B >= 2 * SUBLANE:
        ntiles = 2
    tb = _round_up(_cdiv(B, ntiles), SUBLANE)
    b_pad = ntiles * tb
    if b_pad != B:
        x = jnp.pad(x, ((0, b_pad - B), (0, 0)))

    const = lambda i: (0, 0)  # weights: same block every grid step (resident)
    out_padded = pl.pallas_call(
        dqn_kernel,
        out_shape=jax.ShapeDtypeStruct((b_pad, out_p), out_dtype),
        grid=(ntiles,),
        in_specs=[
            pl.BlockSpec((tb, in_dim), lambda i: (i, 0)),   # x tile (pipelined)
            pl.BlockSpec((in_dim, HID1), const),            # w1
            pl.BlockSpec((1, HID1), const),                 # b1
            pl.BlockSpec((HID1, h2_p), const),              # w2 (padded)
            pl.BlockSpec((1, h2_p), const),                 # b2 (padded)
            pl.BlockSpec((h2_p, out_p), const),             # w3 (padded)
            pl.BlockSpec((1, out_p), const),                # b3 (padded)
        ],
        out_specs=pl.BlockSpec((tb, out_p), lambda i: (i, 0)),
        compiler_params=pltpu.CompilerParams(
            dimension_semantics=("parallel",),
            # 48 MiB: amortizes big tiles on v5e/v6e (128 MiB physical) while
            # staying safely under v7x's 64 MiB per-TC VMEM.
            vmem_limit_bytes=48 * 1024 * 1024,
        ),
    )(x, w1c, b1f, w2c, b2f, w3c, b3f)

    # Slice off batch / lane padding (reads the half-width bf16 slab) and
    # return f32 like the PyTorch module.
    return out_padded[:B, :out_dim].astype(jnp.float32)


def dqn_forward(x, params, *, tile_b=4096, compute_dtype=jnp.bfloat16):
    prepared, out_dim = prepare_params(params, compute_dtype)
    return dqn_forward_prepared(x, prepared, out_dim=out_dim, tile_b=tile_b)


def init_params(key, input_dim, output_dim):
    # PyTorch nn.Linear default init: U(-1/sqrt(fan_in), 1/sqrt(fan_in)).
    ks = jax.random.split(key, 6)

    def lin(kw, kb, fan_in, fan_out):
        bound = 1.0 / jnp.sqrt(fan_in)
        w = jax.random.uniform(kw, (fan_in, fan_out), jnp.float32, -bound, bound)
        b = jax.random.uniform(kb, (1, fan_out), jnp.float32, -bound, bound)
        return w, b

    w1, b1 = lin(ks[0], ks[1], input_dim, HID1)
    w2, b2 = lin(ks[2], ks[3], HID1, HID2)
    w3, b3 = lin(ks[4], ks[5], HID2, output_dim)
    return (w1, b1, w2, b2, w3, b3)


def dqn_reference(x, params, compute_dtype=jnp.bfloat16):
    # Same mixed-precision recipe as the kernel (bf16 matmul in, f32 accum,
    # bf16 output store), so it matches the kernel nearly bit-exactly.
    w1, b1, w2, b2, w3, b3 = params
    cd = compute_dtype
    h1 = jnp.dot(x.astype(cd), w1.astype(cd),
                 preferred_element_type=jnp.float32) + b1
    h1 = jnp.maximum(h1, 0.0)
    h2 = jnp.dot(h1.astype(cd), w2.astype(cd),
                 preferred_element_type=jnp.float32) + b2
    h2 = jnp.maximum(h2, 0.0)
    out = jnp.dot(h2.astype(cd), w3.astype(cd),
                  preferred_element_type=jnp.float32) + b3
    return out.astype(cd).astype(jnp.float32)


if __name__ == "__main__":
    key = jax.random.PRNGKey(0)
    k_x, k_p = jax.random.split(key)

    batch, input_dim, output_dim = 8, 16, 4
    x = jax.random.normal(k_x, (batch, input_dim), jnp.float32)
    params = init_params(k_p, input_dim, output_dim)
    prepared, out_dim = prepare_params(params)

    out = dqn_forward_prepared(x, prepared, out_dim=out_dim)
    out = jax.block_until_ready(out)
    ref = dqn_reference(x, params)
    assert out.shape == (batch, output_dim)
    assert jnp.allclose(out, ref, atol=2e-3, rtol=2e-3)

    # Exercise batch padding (non-multiple-of-16 batch, single tile).
    x2 = jax.random.normal(jax.random.PRNGKey(1), (20, input_dim), jnp.float32)
    out2 = jax.block_until_ready(dqn_forward_prepared(x2, prepared, out_dim=out_dim))
    ref2 = dqn_reference(x2, params)
    assert out2.shape == (20, output_dim)
    assert jnp.allclose(out2, ref2, atol=2e-3, rtol=2e-3)

    # Exercise the multi-tile / "parallel" batch-axis path (>= 2 grid steps).
    x3 = jax.random.normal(jax.random.PRNGKey(2), (100, input_dim), jnp.float32)
    out3 = jax.block_until_ready(dqn_forward_prepared(x3, prepared, out_dim=out_dim))
    ref3 = dqn_reference(x3, params)
    assert out3.shape == (100, output_dim)
    assert jnp.allclose(out3, ref3, atol=2e-3, rtol=2e-3)

    print("KERNEL_OK")
</pallas_src>

<mosaic_0001>
module attributes {stable_mosaic.version = 11 : i64} {
  func.func @dqn_kernel(%arg0: i32, %arg1: memref<16x16xf32, #tpu.memory_space<vmem>>, %arg2: memref<16x128xbf16, #tpu.memory_space<vmem>>, %arg3: memref<1x128xf32, #tpu.memory_space<vmem>>, %arg4: memref<128x128xbf16, #tpu.memory_space<vmem>>, %arg5: memref<1x128xf32, #tpu.memory_space<vmem>>, %arg6: memref<128x128xbf16, #tpu.memory_space<vmem>>, %arg7: memref<1x128xf32, #tpu.memory_space<vmem>>, %arg8: memref<16x128xbf16, #tpu.memory_space<vmem>>) attributes {dimension_semantics = [#tpu.dimension_semantics<parallel>], iteration_bounds = array<i64: 1>, scalar_prefetch = 0 : i64, scratch_operands = 0 : i64, tpu.core_type = #tpu.core_type<tc>, window_params = [{transform_indices = @transform_0, window_bounds = array<i64: 16, 16>}, {pipeline_mode = #tpu.pipeline_mode<synchronous>, transform_indices = @transform_1, window_bounds = array<i64: 16, 128>}, {pipeline_mode = #tpu.pipeline_mode<synchronous>, transform_indices = @transform_2, window_bounds = array<i64: 1, 128>}, {pipeline_mode = #tpu.pipeline_mode<synchronous>, transform_indices = @transform_3, window_bounds = array<i64: 128, 128>}, {pipeline_mode = #tpu.pipeline_mode<synchronous>, transform_indices = @transform_4, window_bounds = array<i64: 1, 128>}, {pipeline_mode = #tpu.pipeline_mode<synchronous>, transform_indices = @transform_5, window_bounds = array<i64: 128, 128>}, {pipeline_mode = #tpu.pipeline_mode<synchronous>, transform_indices = @transform_6, window_bounds = array<i64: 1, 128>}, {transform_indices = @transform_7, window_bounds = array<i64: 16, 128>}]} {
    %c0 = arith.constant 0 : index
    %c0_0 = arith.constant 0 : index
    %0 = vector.load %arg1[%c0, %c0_0] : memref<16x16xf32, #tpu.memory_space<vmem>>, vector<16x16xf32>
    %1 = arith.truncf %0 : vector<16x16xf32> to vector<16x16xbf16>
    %c0_1 = arith.constant 0 : index
    %c0_2 = arith.constant 0 : index
    %2 = vector.load %arg2[%c0_1, %c0_2] : memref<16x128xbf16, #tpu.memory_space<vmem>>, vector<16x128xbf16>
    %cst = arith.constant dense<0.000000e+00> : vector<16x128xf32>
    %3 = tpu.matmul %1, %2, %cst {dimension_numbers = #tpu.dot_dimension_numbers<[1], [0], [0], [1], [0, 0, 1, 1], [], []>} : vector<16x16xbf16>, vector<16x128xbf16>, vector<16x128xf32> -> vector<16x128xf32>
    %c0_3 = arith.constant 0 : index
    %c0_4 = arith.constant 0 : index
    %4 = vector.load %arg3[%c0_3, %c0_4] : memref<1x128xf32, #tpu.memory_space<vmem>>, vector<1x128xf32>
    %5 = vector.broadcast %4 : vector<1x128xf32> to vector<16x128xf32>
    %6 = arith.addf %3, %5 : vector<16x128xf32>
    %cst_5 = arith.constant 0.000000e+00 : f32
    %7 = vector.broadcast %cst_5 : f32 to vector<16x128xf32>
    %8 = arith.maximumf %6, %7 : vector<16x128xf32>
    %9 = arith.truncf %8 : vector<16x128xf32> to vector<16x128xbf16>
    %c0_6 = arith.constant 0 : index
    %c0_7 = arith.constant 0 : index
    %10 = vector.load %arg4[%c0_6, %c0_7] : memref<128x128xbf16, #tpu.memory_space<vmem>>, vector<128x128xbf16>
    %cst_8 = arith.constant dense<0.000000e+00> : vector<16x128xf32>
    %11 = tpu.matmul %9, %10, %cst_8 {dimension_numbers = #tpu.dot_dimension_numbers<[1], [0], [0], [1], [0, 0, 1, 1], [], []>} : vector<16x128xbf16>, vector<128x128xbf16>, vector<16x128xf32> -> vector<16x128xf32>
    %c0_9 = arith.constant 0 : index
    %c0_10 = arith.constant 0 : index
    %12 = vector.load %arg5[%c0_9, %c0_10] : memref<1x128xf32, #tpu.memory_space<vmem>>, vector<1x128xf32>
    %13 = vector.broadcast %12 : vector<1x128xf32> to vector<16x128xf32>
    %14 = arith.addf %11, %13 : vector<16x128xf32>
    %cst_11 = arith.constant 0.000000e+00 : f32
    %15 = vector.broadcast %cst_11 : f32 to vector<16x128xf32>
    %16 = arith.maximumf %14, %15 : vector<16x128xf32>
    %17 = arith.truncf %16 : vector<16x128xf32> to vector<16x128xbf16>
    %c0_12 = arith.constant 0 : index
    %c0_13 = arith.constant 0 : index
    %18 = vector.load %arg6[%c0_12, %c0_13] : memref<128x128xbf16, #tpu.memory_space<vmem>>, vector<128x128xbf16>
    %cst_14 = arith.constant dense<0.000000e+00> : vector<16x128xf32>
    %19 = tpu.matmul %17, %18, %cst_14 {dimension_numbers = #tpu.dot_dimension_numbers<[1], [0], [0], [1], [0, 0, 1, 1], [], []>} : vector<16x128xbf16>, vector<128x128xbf16>, vector<16x128xf32> -> vector<16x128xf32>
    %c0_15 = arith.constant 0 : index
    %c0_16 = arith.constant 0 : index
    %20 = vector.load %arg7[%c0_15, %c0_16] : memref<1x128xf32, #tpu.memory_space<vmem>>, vector<1x128xf32>
    %21 = vector.broadcast %20 : vector<1x128xf32> to vector<16x128xf32>
    %22 = arith.addf %19, %21 : vector<16x128xf32>
    %23 = arith.truncf %22 : vector<16x128xf32> to vector<16x128xbf16>
    %c0_17 = arith.constant 0 : index
    %c0_18 = arith.constant 0 : index
    %24 = vector.load %arg8[%c0_17, %c0_18] : memref<16x128xbf16, #tpu.memory_space<vmem>>, vector<16x128xbf16>
    tpu.vector_store %arg8[%c0_17, %c0_18], %23 {strides = array<i32>} : memref<16x128xbf16, #tpu.memory_space<vmem>>, vector<16x128xbf16>,
    return
  }
  func.func @transform_0(%arg0: i32) -> (i32, i32) {
    %c0_i32 = arith.constant 0 : i32
    %c0_i32_0 = arith.constant 0 : i32
    return %arg0, %c0_i32 : i32, i32
  }
  func.func @transform_1(%arg0: i32) -> (i32, i32) {
    %c0_i32 = arith.constant 0 : i32
    %c0_i32_0 = arith.constant 0 : i32
    %c0_i32_1 = arith.constant 0 : i32
    return %c0_i32, %c0_i32_0 : i32, i32
  }
  func.func @transform_2(%arg0: i32) -> (i32, i32) {
    %c0_i32 = arith.constant 0 : i32
    %c0_i32_0 = arith.constant 0 : i32
    %c0_i32_1 = arith.constant 0 : i32
    return %c0_i32, %c0_i32_0 : i32, i32
  }
  func.func @transform_3(%arg0: i32) -> (i32, i32) {
    %c0_i32 = arith.constant 0 : i32
    %c0_i32_0 = arith.constant 0 : i32
    %c0_i32_1 = arith.constant 0 : i32
    return %c0_i32, %c0_i32_0 : i32, i32
  }
  func.func @transform_4(%arg0: i32) -> (i32, i32) {
    %c0_i32 = arith.constant 0 : i32
    %c0_i32_0 = arith.constant 0 : i32
    %c0_i32_1 = arith.constant 0 : i32
    return %c0_i32, %c0_i32_0 : i32, i32
  }
  func.func @transform_5(%arg0: i32) -> (i32, i32) {
    %c0_i32 = arith.constant 0 : i32
    %c0_i32_0 = arith.constant 0 : i32
    %c0_i32_1 = arith.constant 0 : i32
    return %c0_i32, %c0_i32_0 : i32, i32
  }
  func.func @transform_6(%arg0: i32) -> (i32, i32) {
    %c0_i32 = arith.constant 0 : i32
    %c0_i32_0 = arith.constant 0 : i32
    %c0_i32_1 = arith.constant 0 : i32
    return %c0_i32, %c0_i32_0 : i32, i32
  }
  func.func @transform_7(%arg0: i32) -> (i32, i32) {
    %c0_i32 = arith.constant 0 : i32
    %c0_i32_0 = arith.constant 0 : i32
    return %arg0, %c0_i32 : i32, i32
  }
}

</mosaic_0001>

<bundles_post_ra>
// kernel: dqn_forward_prepared.1
= control target key start
LH: loop header
LB: loop body
LE: loop exit
PB: predicated region body
PF: predicated region fallthrough
CT: control target
= control target key end

     0   :  { %12 = vsyncpa [#allocation3], 0  ;;  %s623_s0 = inlined_call_operand.vmem [shape: f32[16,16], index: 0, kind: input, shape index: {}]   ;;  %s624_s1 = inlined_call_operand.vmem [shape: bf16[16,128], index: 1, kind: input, shape index: {}]   ;;  %s625_s2 = inlined_call_operand.vmem [shape: f32[1,128], index: 2, kind: input, shape index: {}]   ;;  %s626_s3 = inlined_call_operand.hbm [shape: bf16[128,128], index: 3, kind: input, shape index: {}]   ;;  %s627_s4 = inlined_call_operand.vmem [shape: f32[1,128], index: 4, kind: input, shape index: {}]   ;;  %s628_s5 = inlined_call_operand.hbm [shape: bf16[128,128], index: 5, kind: input, shape index: {}]   ;;  %s629_s6 = inlined_call_operand.vmem [shape: f32[1,128], index: 6, kind: input, shape index: {}]   ;;  %s630_s7 = inlined_call_operand.vmem [shape: bf16[16,128], index: 7, kind: output, shape index: {}]  }
   0x1   :  { %13 = vsyncpa [#allocation5], 0  ;;  %s527_s24 = smov [#allocation2]  }
   0x2   :  { %s25_s25 = sshll.u32 %s527_s24, 4  ;;  %s26_s25 = int_to_ptr.vmem [resolvable:$true] %s25_s25 }
   0x3   :  { %s491_s26 = scalar_lea.vmem %s26_s25, 1024  ;;  %p496_p1 = scmp.lt.s32.totalorder %s26_s25, %s26_s25 }
   0x4   :  { %p492_p0 = scmp.ne.s32.totalorder %s26_s25, %s491_s26  ;;  %p497_p2 = scmp.lt.s32.totalorder %s491_s26, %s491_s26 }
   0x6   :  { %p498_p3 = por %p497_p2, %p496_p1 }
   0x8   :  { %p499_p4 = pnand %p498_p3, %p492_p0 }
   0xa   :  { %502 = shalt.err (!%p499_p4)
}
   0xb   :  { %s528_s27 = smov 64   ;;  %s529_s28 = smov 4  }
   0xc   :  { %31 = dma.hbm_to_vmem [thread:$0]  %s626_s3, 1024, %s26_s25, [#allocation3], %s528_s27, %s528_s27, %s529_s28  }
   0xd   :  { %s530_s8 = smov [#allocation4]  }
   0xe   :  { %s39_s9 = sshll.u32 %s530_s8, 4  ;;  %s40_s9 = int_to_ptr.vmem [resolvable:$true] %s39_s9 }
   0xf   :  { %s511_s10 = scalar_lea.vmem %s40_s9, 1024  ;;  %p516_p6 = scmp.lt.s32.totalorder %s40_s9, %s40_s9 }
  0x10   :  { %p512_p5 = scmp.ne.s32.totalorder %s40_s9, %s511_s10  ;;  %p517_p7 = scmp.lt.s32.totalorder %s511_s10, %s511_s10 }
  0x12   :  { %p518_p8 = por %p517_p7, %p516_p6 }
  0x14   :  { %p519_p9 = pnand %p518_p8, %p512_p5 }
  0x16   :  { %522 = shalt.err (!%p519_p9)
}
  0x17   :  { %45 = dma.hbm_to_vmem [thread:$0]  %s628_s5, 1024, %s40_s9, [#allocation5], %s528_s27, %s528_s27, %s529_s28  }
  0x18   :  { %523 = dma.done.wait [#allocation3], 1024  }
  0x19   :  { %524 = vsyncadd [#allocation3], 4294966272 }
  0x1a   :  { %525 = dma.done.wait [#allocation5], 1024  }
  0x1b   :  { %526 = vsyncadd [#allocation5], 4294966272  ;;  %v531_v0 = vmov 0.0   ;;  %vm532_vm0 = vmmov 0   ;;  %v466_v1 = vld [vmem:[%s624_s1] sm:$0xff]   ;;  %v56_v3 = vld [vmem:[%s623_s0 + $0x8] sm:$0xff] }
  0x1c   :  { %414 = vmatprep.subr.bf16.mxu0 %v531_v0  ;;  %416 = vmatprep.mubr.msk.bf16.mxu0 %vm532_vm0, %v531_v0  ;;  %v55_v2 = vld [vmem:[%s623_s0] sm:$0xff]  ;;  %vm73_vm1 = vcmask 130048   ;;  %v467_v5 = vld [vmem:[#allocation2 + $0x38] sm:$0xff]   ;;  %v468_v6 = vld [vmem:[#allocation2 + $0x30] sm:$0xff]  }
  0x1d   :  { %420 = vmatprep.subr.bf16.mxu1 %v531_v0  ;;  %436 = vmatprep.mubr.msk.bf16.mxu1 %vm532_vm0, %v531_v0  ;;  %v57_v4 = vpack.c.bf16 %v56_v3, %v55_v2  ;;  %v469_v7 = vld [vmem:[#allocation2 + $0x28] sm:$0xff]   ;;  %v470_v8 = vld [vmem:[#allocation2 + $0x20] sm:$0xff]   ;;  %v471_v9 = vld [vmem:[#allocation2 + $0x18] sm:$0xff]  }
  0x1e   :  { %415 = vmatpush3.bf16.msra.mxu0 %v466_v1  ;;  %421 = vmatpush3.bf16.msra.mxu1 %v467_v5  ;;  %v472_v10 = vld [vmem:[#allocation2 + $0x10] sm:$0xff]   ;;  %v473_v11 = vld [vmem:[#allocation2 + $0x8] sm:$0xff]   ;;  %v474_v12 = vld [vmem:[#allocation2] sm:$0xff]  }
  0x1f   :  { %440 = vmatprep.subr.bf16.mxu0 %v531_v0  ;;  %422 = vmatprep.subr.bf16.mxu1 %v531_v0  ;;  %v475_v13 = vld [vmem:[#allocation4 + $0x38] sm:$0xff]   ;;  %v476_v14 = vld [vmem:[#allocation4 + $0x30] sm:$0xff]   ;;  %v477_v15 = vld [vmem:[#allocation4 + $0x28] sm:$0xff]  }
  0x20   :  { %v478_v16 = vld [vmem:[#allocation4 + $0x20] sm:$0xff]   ;;  %v479_v17 = vld [vmem:[#allocation4 + $0x18] sm:$0xff]   ;;  %v480_v28 = vld [vmem:[#allocation4 + $0x10] sm:$0xff]  }
  0x21   :  { %417 = vmatmul.mubr.msk.bf16.vlgmr.msra.gmra.mxu0 %vm73_vm1, %v57_v4  ;;  %v364_v18 = vld [vmem:[%s625_s2] ss:$0 sm:$0xff]  ;;  %v481_v29 = vld [vmem:[#allocation4 + $0x8] sm:$0xff]  }
  0x22   :  { %456 = vmatprep.mubr.msk.bf16.mxu0 %vm532_vm0, %v531_v0  ;;  %423 = vmatpush3.bf16.msra.mxu1 %v468_v6  ;;  %v482_v30 = vld [vmem:[#allocation4] sm:$0xff]  }
  0x23   :  { %424 = vmatprep.subr.bf16.mxu1 %v531_v0  ;;  %441 = vmatpush3.bf16.msra.mxu0 %v475_v13  ;;  %v367_v31 = vld [vmem:[%s627_s4] ss:$0 sm:$0xff] }
  0x24   :  { %442 = vmatprep.subr.bf16.mxu0 %v531_v0  ;;  %v376_v42 = vld [vmem:[%s629_s6] ss:$0 sm:$0xff] }
  0x26   :  { %425 = vmatpush3.bf16.msra.mxu1 %v469_v7 }
  0x27   :  { %426 = vmatprep.subr.bf16.mxu1 %v531_v0  ;;  %443 = vmatpush3.bf16.msra.mxu0 %v476_v14 }
  0x28   :  { %444 = vmatprep.subr.bf16.mxu0 %v531_v0 }
  0x2a   :  { %427 = vmatpush3.bf16.msra.mxu1 %v470_v8 }
  0x2b   :  { %428 = vmatprep.subr.bf16.mxu1 %v531_v0  ;;  %445 = vmatpush3.bf16.msra.mxu0 %v477_v15 }
  0x2c   :  { %446 = vmatprep.subr.bf16.mxu0 %v531_v0 }
  0x2e   :  { %429 = vmatpush3.bf16.msra.mxu1 %v471_v9 }
  0x2f   :  { %430 = vmatprep.subr.bf16.mxu1 %v531_v0  ;;  %447 = vmatpush3.bf16.msra.mxu0 %v478_v16 }
  0x30   :  { %448 = vmatprep.subr.bf16.mxu0 %v531_v0 }
  0x32   :  { %431 = vmatpush3.bf16.msra.mxu1 %v472_v10 }
  0x33   :  { %432 = vmatprep.subr.bf16.mxu1 %v531_v0  ;;  %449 = vmatpush3.bf16.msra.mxu0 %v479_v17 }
  0x34   :  { %450 = vmatprep.subr.bf16.mxu0 %v531_v0 }
  0x36   :  { %433 = vmatpush3.bf16.msra.mxu1 %v473_v11 }
  0x37   :  { %434 = vmatprep.subr.bf16.mxu1 %v531_v0  ;;  %451 = vmatpush3.bf16.msra.mxu0 %v480_v28 }
  0x38   :  { %452 = vmatprep.subr.bf16.mxu0 %v531_v0 }
  0x3a   :  { %435 = vmatpush3.bf16.msra.mxu1 %v474_v12 }
  0x3b   :  { %453 = vmatpush3.bf16.msra.mxu0 %v481_v29 }
  0x3c   :  { %454 = vmatprep.subr.bf16.mxu0 %v531_v0 }
  0x3f   :  { %455 = vmatpush3.bf16.msra.mxu0 %v482_v30 }
  0xe1   :  { %v111_v19 = vpop.f32.mrf.mxu0 }
  0xe2   :  { %v112_v21 = vadd.f32 %v364_v18, %v111_v19 }
  0xe3   :  { %v418_v20 = vpop.f32.mrf.mxu0 }
  0xe4   :  { %v118_v25 = vmax.f32 %v112_v21, 0.0 }
  0xe5   :  { %v114_v22 = vpop.f32.mrf.mxu0 }
  0xe6   :  { %v115_v23 = vadd.f32 %v364_v18, %v114_v22 }
  0xe7   :  { %v419_v24 = vpop.f32.mrf.mxu0 }
  0xe8   :  { %v119_v26 = vmax.f32 %v115_v23, 0.0 }
  0xea   :  { %v120_v27 = vpack.c.bf16 %v119_v26, %v118_v25 }
  0xec   :  { %437 = vmatmul.mubr.bf16.vlgmr.msra.gmra.mxu1 %v120_v27 }
 0x1ac   :  { %v226_v32 = vpop.f32.mrf.mxu1 }
 0x1ad   :  { %v227_v34 = vadd.f32 %v367_v31, %v226_v32 }
 0x1ae   :  { %v438_v33 = vpop.f32.mrf.mxu1 }
 0x1af   :  { %v233_v38 = vmax.f32 %v227_v34, 0.0 }
 0x1b0   :  { %v229_v35 = vpop.f32.mrf.mxu1 }
 0x1b1   :  { %v230_v36 = vadd.f32 %v367_v31, %v229_v35 }
 0x1b2   :  { %v439_v37 = vpop.f32.mrf.mxu1 }
 0x1b3   :  { %v234_v39 = vmax.f32 %v230_v36, 0.0 }
 0x1b5   :  { %v235_v40 = vpack.c.bf16 %v234_v39, %v233_v38 }
 0x1b7   :  { %457 = vmatmul.mubr.bf16.vlgmr.msra.gmra.mxu0 %v235_v40 }
 0x277   :  { %v341_v41 = vpop.f32.mrf.mxu0 }
 0x278   :  { %v342_v45 = vadd.f32 %v376_v42, %v341_v41 }
 0x279   :  { %v458_v43 = vpop.f32.mrf.mxu0 }
 0x27b   :  { %v344_v44 = vpop.f32.mrf.mxu0 }
 0x27c   :  { %v345_v46 = vadd.f32 %v376_v42, %v344_v44 }
 0x27d   :  { %v459_v47 = vpop.f32.mrf.mxu0 }
 0x27e   :  { %v392_v48 = vpack.c.bf16 %v345_v46, %v342_v45 }
 0x280   :  { %393 = vst [vmem:[%s630_s7] sm:$0xff] %v392_v48  }
 0x281   :  { %362 = vsyncpa [#allocation3], 1 }
 0x282   :  { %363 = vsyncpa [#allocation5], 1 }

</bundles_post_ra>
